<compile_context>
chip_gen: v7x
topology: tpu7x:2x2x1
jax: 0.10.0
libtpu: 0.0.40
codegen_flags: <defaults>
</compile_context>

<pallas_src>
import jax
import jax.numpy as jnp
from jax.experimental import pallas as pl
from jax.experimental.pallas import tpu as pltpu

_LANES = 128
_MAX_TILE_ROWS = 2048   # (2048, 128) f32 = 1 MiB per input per grid step
_NUM_CORES = 2          # v7x has 2 TensorCores; harmless (size-1) elsewhere


def dice_loss(inputs, targets, smooth=1.0):
    """Matches DiceLoss.forward: 1 - (2*I + smooth) / (sum_in + sum_tgt + smooth)."""
    n = int(inputs.size)
    if n == 0:
        zero = jnp.float32(0.0)
        return 1.0 - (2.0 * zero + smooth) / (zero + smooth)

    x = jnp.ravel(inputs)
    t = jnp.ravel(targets)
    # Keep the original floating dtype (cast happens in-kernel); only promote
    # non-float (bool / int) arrays so the kernel sees a vectorizable dtype.
    if not jnp.issubdtype(x.dtype, jnp.floating):
        x = x.astype(jnp.float32)
    if not jnp.issubdtype(t.dtype, jnp.floating):
        t = t.astype(jnp.float32)

    # Pad only the <128-element tail so the flat vector reshapes to (m, 128).
    pad = (-n) % _LANES
    if pad:
        x = jnp.pad(x, (0, pad))
        t = jnp.pad(t, (0, pad))
    m = (n + pad) // _LANES
    x2 = x.reshape(m, _LANES)
    t2 = t.reshape(m, _LANES)

    tile_rows = m if m <= _MAX_TILE_ROWS else _MAX_TILE_ROWS
    grid_rows = (m + tile_rows - 1) // tile_rows        # total row-blocks
    outer = min(_NUM_CORES, grid_rows)                  # core split
    bpc = (grid_rows + outer - 1) // outer              # row-blocks per core

    # Masking is only needed if some tile covers elements with index >= n.
    needs_mask = (pad != 0) or (grid_rows * tile_rows != m) or (outer * bpc != grid_rows)

    def in_index(c, i):
        blk = jnp.minimum(c * bpc + i, grid_rows - 1)   # clamp phantom blocks
        return (blk, 0)

    def out_index(c, i):
        return (c, 0, 0)

    def kernel(x_ref, t_ref, oi_ref, od_ref):
        i = pl.program_id(1)

        @pl.when(i == 0)
        def _init():
            oi_ref[...] = jnp.zeros_like(oi_ref)
            od_ref[...] = jnp.zeros_like(od_ref)

        xv = x_ref[...].astype(jnp.float32)
        tv = t_ref[...].astype(jnp.float32)
        s = jax.nn.sigmoid(xv)

        if needs_mask:
            c = pl.program_id(0)
            blk = c * bpc + i                            # logical (unclamped) block
            row0 = blk * tile_rows
            row = row0 + jax.lax.broadcasted_iota(jnp.int32, (tile_rows, _LANES), 0)
            lane = jax.lax.broadcasted_iota(jnp.int32, (tile_rows, _LANES), 1)
            valid = (row * _LANES + lane) < n
            s = jnp.where(valid, s, 0.0)
            tv = jnp.where(valid, tv, 0.0)

        # Lane-wise partial sums only; full cross-lane reduce happens once, outside.
        oi_ref[0] += jnp.sum(s * tv, axis=0, keepdims=True)   # sum(sigmoid(x) * t)
        od_ref[0] += jnp.sum(s + tv, axis=0, keepdims=True)   # sum(sigmoid(x)) + sum(t)

    out_block = pl.BlockSpec((1, 1, _LANES), out_index)
    part_i, part_d = pl.pallas_call(
        kernel,
        out_shape=(
            jax.ShapeDtypeStruct((outer, 1, _LANES), jnp.float32),
            jax.ShapeDtypeStruct((outer, 1, _LANES), jnp.float32),
        ),
        grid_spec=pltpu.PrefetchScalarGridSpec(
            num_scalar_prefetch=0,
            grid=(outer, bpc),
            in_specs=[
                pl.BlockSpec((tile_rows, _LANES), in_index),
                pl.BlockSpec((tile_rows, _LANES), in_index),
            ],
            out_specs=[out_block, out_block],
        ),
        compiler_params=pltpu.CompilerParams(
            dimension_semantics=("parallel", "arbitrary")),
    )(x2, t2)

    intersection = jnp.sum(part_i)
    denom = jnp.sum(part_d)
    dice = (2.0 * intersection + smooth) / (denom + smooth)
    return 1.0 - dice


def _reference(inputs, targets, smooth=1.0):
    s = jax.nn.sigmoid(inputs.astype(jnp.float32)).ravel()
    t = targets.astype(jnp.float32).ravel()
    inter = jnp.sum(s * t)
    return 1.0 - (2.0 * inter + smooth) / (jnp.sum(s) + jnp.sum(t) + smooth)


if __name__ == "__main__":
    key = jax.random.PRNGKey(0)
    k1, k2, k3, k4 = jax.random.split(key, 4)

    # Segmentation-style input: (N, C, H, W)
    x = jax.random.normal(k1, (2, 4, 16, 16), dtype=jnp.float32)
    tgt = (jax.random.uniform(k2, (2, 4, 16, 16)) > 0.5).astype(jnp.float32)

    loss = dice_loss(x, tgt, smooth=1.0)
    loss = jax.block_until_ready(loss)
    ref = _reference(x, tgt, 1.0)
    assert jnp.allclose(loss, ref, atol=1e-5, rtol=1e-5), (loss, ref)

    # Ragged size (not a multiple of 128) exercises the in-kernel mask path.
    x2 = jax.random.normal(k3, (2, 3, 7, 11), dtype=jnp.float32)
    t2 = (jax.random.uniform(k4, (2, 3, 7, 11)) > 0.5).astype(jnp.float32)
    loss2 = jax.block_until_ready(dice_loss(x2, t2, smooth=1.0))
    ref2 = _reference(x2, t2, 1.0)
    assert jnp.allclose(loss2, ref2, atol=1e-5, rtol=1e-5), (loss2, ref2)

    print("KERNEL_OK")
</pallas_src>

<mosaic_0001>
module attributes {stable_mosaic.version = 11 : i64} {
  func.func @kernel(%arg0: i32, %arg1: i32, %arg2: memref<16x128xf32, #tpu.memory_space<vmem>>, %arg3: memref<16x128xf32, #tpu.memory_space<vmem>>, %arg4: memref<1x1x128xf32, #tpu.memory_space<vmem>>, %arg5: memref<1x1x128xf32, #tpu.memory_space<vmem>>) attributes {dimension_semantics = [#tpu.dimension_semantics<parallel>, #tpu.dimension_semantics<arbitrary>], iteration_bounds = array<i64: 1, 1>, scalar_prefetch = 0 : i64, scratch_operands = 0 : i64, tpu.core_type = #tpu.core_type<tc>, window_params = [{transform_indices = @transform_0, window_bounds = array<i64: 16, 128>}, {transform_indices = @transform_1, window_bounds = array<i64: 16, 128>}, {transform_indices = @transform_2, window_bounds = array<i64: 1, 1, 128>}, {transform_indices = @transform_3, window_bounds = array<i64: 1, 1, 128>}]} {
    %c0_i32 = arith.constant 0 : i32
    %0 = arith.cmpi eq, %arg1, %c0_i32 : i32
    %1 = arith.extui %0 : i1 to i32
    %c0_i32_0 = arith.constant 0 : i32
    %2 = arith.cmpi ne, %1, %c0_i32_0 : i32
    scf.if %2 {
      %cst_18 = arith.constant 0.000000e+00 : f32
      %28 = vector.broadcast %cst_18 : f32 to vector<1x1x128xf32>
      %c0_19 = arith.constant 0 : index
      %c0_20 = arith.constant 0 : index
      %c0_21 = arith.constant 0 : index
      %29 = vector.load %arg4[%c0_19, %c0_20, %c0_21] : memref<1x1x128xf32, #tpu.memory_space<vmem>>, vector<1x1x128xf32>
      tpu.vector_store %arg4[%c0_19, %c0_20, %c0_21], %28 {strides = array<i32>} : memref<1x1x128xf32, #tpu.memory_space<vmem>>, vector<1x1x128xf32>,
      %cst_22 = arith.constant 0.000000e+00 : f32
      %30 = vector.broadcast %cst_22 : f32 to vector<1x1x128xf32>
      %c0_23 = arith.constant 0 : index
      %c0_24 = arith.constant 0 : index
      %c0_25 = arith.constant 0 : index
      %31 = vector.load %arg5[%c0_23, %c0_24, %c0_25] : memref<1x1x128xf32, #tpu.memory_space<vmem>>, vector<1x1x128xf32>
      tpu.vector_store %arg5[%c0_23, %c0_24, %c0_25], %30 {strides = array<i32>} : memref<1x1x128xf32, #tpu.memory_space<vmem>>, vector<1x1x128xf32>,
    } else {
    }
    %c0 = arith.constant 0 : index
    %c0_1 = arith.constant 0 : index
    %3 = vector.load %arg2[%c0, %c0_1] : memref<16x128xf32, #tpu.memory_space<vmem>>, vector<16x128xf32>
    %c0_2 = arith.constant 0 : index
    %c0_3 = arith.constant 0 : index
    %4 = vector.load %arg3[%c0_2, %c0_3] : memref<16x128xf32, #tpu.memory_space<vmem>>, vector<16x128xf32>
    %5 = arith.negf %3 : vector<16x128xf32>
    %6 = math.exp %5 : vector<16x128xf32>
    %cst = arith.constant 1.000000e+00 : f32
    %7 = vector.broadcast %cst : f32 to vector<16x128xf32>
    %8 = arith.addf %7, %6 : vector<16x128xf32>
    %9 = arith.divf %7, %8 : vector<16x128xf32>
    %c0_4 = arith.constant 0 : index
    %c0_5 = arith.constant 0 : index
    %c0_6 = arith.constant 0 : index
    %10 = vector.load %arg4[%c0_4, %c0_5, %c0_6] : memref<1x1x128xf32, #tpu.memory_space<vmem>>, vector<1x1x128xf32>
    %11 = vector.shape_cast %10 : vector<1x1x128xf32> to vector<1x128xf32>
    %12 = arith.mulf %9, %4 : vector<16x128xf32>
    %cst_7 = arith.constant dense<0.000000e+00> : vector<128xf32>
    %13 = vector.multi_reduction <add>, %12, %cst_7 [0] : vector<16x128xf32> to vector<128xf32>
    %14 = vector.shape_cast %13 : vector<128xf32> to vector<1x128xf32>
    %15 = arith.addf %11, %14 : vector<1x128xf32>
    %c0_8 = arith.constant 0 : index
    %c0_9 = arith.constant 0 : index
    %c0_10 = arith.constant 0 : index
    %16 = vector.load %arg4[%c0_8, %c0_9, %c0_10] : memref<1x1x128xf32, #tpu.memory_space<vmem>>, vector<1x1x128xf32>
    %17 = vector.shape_cast %16 : vector<1x1x128xf32> to vector<1x128xf32>
    %18 = vector.shape_cast %15 : vector<1x128xf32> to vector<1x1x128xf32>
    tpu.vector_store %arg4[%c0_8, %c0_9, %c0_10], %18 {strides = array<i32>} : memref<1x1x128xf32, #tpu.memory_space<vmem>>, vector<1x1x128xf32>,
    %c0_11 = arith.constant 0 : index
    %c0_12 = arith.constant 0 : index
    %c0_13 = arith.constant 0 : index
    %19 = vector.load %arg5[%c0_11, %c0_12, %c0_13] : memref<1x1x128xf32, #tpu.memory_space<vmem>>, vector<1x1x128xf32>
    %20 = vector.shape_cast %19 : vector<1x1x128xf32> to vector<1x128xf32>
    %21 = arith.addf %9, %4 : vector<16x128xf32>
    %cst_14 = arith.constant dense<0.000000e+00> : vector<128xf32>
    %22 = vector.multi_reduction <add>, %21, %cst_14 [0] : vector<16x128xf32> to vector<128xf32>
    %23 = vector.shape_cast %22 : vector<128xf32> to vector<1x128xf32>
    %24 = arith.addf %20, %23 : vector<1x128xf32>
    %c0_15 = arith.constant 0 : index
    %c0_16 = arith.constant 0 : index
    %c0_17 = arith.constant 0 : index
    %25 = vector.load %arg5[%c0_15, %c0_16, %c0_17] : memref<1x1x128xf32, #tpu.memory_space<vmem>>, vector<1x1x128xf32>
    %26 = vector.shape_cast %25 : vector<1x1x128xf32> to vector<1x128xf32>
    %27 = vector.shape_cast %24 : vector<1x128xf32> to vector<1x1x128xf32>
    tpu.vector_store %arg5[%c0_15, %c0_16, %c0_17], %27 {strides = array<i32>} : memref<1x1x128xf32, #tpu.memory_space<vmem>>, vector<1x1x128xf32>,
    return
  }
  func.func @transform_0(%arg0: i32, %arg1: i32) -> (i32, i32) {
    %c1_i32 = arith.constant 1 : i32
    %0 = arith.muli %arg0, %c1_i32 : i32
    %1 = arith.addi %0, %arg1 : i32
    %c0_i32 = arith.constant 0 : i32
    %2 = arith.minsi %1, %c0_i32 : i32
    %c0_i32_0 = arith.constant 0 : i32
    %c0_i32_1 = arith.constant 0 : i32
    return %2, %c0_i32_0 : i32, i32
  }
  func.func @transform_1(%arg0: i32, %arg1: i32) -> (i32, i32) {
    %c1_i32 = arith.constant 1 : i32
    %0 = arith.muli %arg0, %c1_i32 : i32
    %1 = arith.addi %0, %arg1 : i32
    %c0_i32 = arith.constant 0 : i32
    %2 = arith.minsi %1, %c0_i32 : i32
    %c0_i32_0 = arith.constant 0 : i32
    %c0_i32_1 = arith.constant 0 : i32
    return %2, %c0_i32_0 : i32, i32
  }
  func.func @transform_2(%arg0: i32, %arg1: i32) -> (i32, i32, i32) {
    %c0_i32 = arith.constant 0 : i32
    %c0_i32_0 = arith.constant 0 : i32
    %c0_i32_1 = arith.constant 0 : i32
    return %arg0, %c0_i32, %c0_i32_0 : i32, i32, i32
  }
  func.func @transform_3(%arg0: i32, %arg1: i32) -> (i32, i32, i32) {
    %c0_i32 = arith.constant 0 : i32
    %c0_i32_0 = arith.constant 0 : i32
    %c0_i32_1 = arith.constant 0 : i32
    return %arg0, %c0_i32, %c0_i32_0 : i32, i32, i32
  }
}

</mosaic_0001>

<bundles_post_ra>
// kernel: tpu_custom_call.1
= control target key start
LH: loop header
LB: loop body
LE: loop exit
PB: predicated region body
PF: predicated region fallthrough
CT: control target
= control target key end

     0   :  { %9 = vsyncpa [#allocation3], 0  ;;  %s339_s0 = inlined_call_operand.hbm [shape: f32[16,128], index: 0, kind: input, shape index: {}]   ;;  %s340_s1 = inlined_call_operand.hbm [shape: f32[16,128], index: 1, kind: input, shape index: {}]   ;;  %s341_s2 = inlined_call_operand.hbm [shape: f32[1,1,128], index: 2, kind: output, shape index: {0}]   ;;  %s342_s3 = inlined_call_operand.hbm [shape: f32[1,1,128], index: 3, kind: output, shape index: {1}]  }
   0x1   :  { %10 = vsyncpa [#allocation6], 0 }
   0x2   :  { %11 = vsyncpa [#allocation4], 0 }
   0x3   :  { %12 = vsyncpa [#allocation9], 0  ;;  %s256_s12 = smov [#allocation2]   ;;  %s160_s16 = scalar_lea.hbm %s339_s0, 256 }
   0x4   :  { %s24_s13 = sshll.u32 %s256_s12, 4  ;;  %p161_p0 = scmp.ne.s32.totalorder %s339_s0, %s160_s16  ;;  %s25_s13 = int_to_ptr.vmem [resolvable:$true] %s24_s13 }
   0x5   :  { %p164_p1 = scmp.lt.u32.totalorder %s160_s16, %s339_s0 }
   0x7   :  { %p166_p2 = pnand %p164_p1, %p161_p0 }
   0x9   :  { %169 = shalt.err (!%p166_p2)
}
   0xa   :  { %s170_s21 = scalar_lea.vmem %s25_s13, 256  ;;  %p175_p4 = scmp.lt.s32.totalorder %s25_s13, %s25_s13 }
   0xb   :  { %p171_p3 = scmp.ne.s32.totalorder %s25_s13, %s170_s21  ;;  %p176_p5 = scmp.lt.s32.totalorder %s170_s21, %s170_s21 }
   0xd   :  { %p177_p6 = por %p176_p5, %p175_p4 }
   0xf   :  { %p178_p7 = pnand %p177_p6, %p171_p3 }
  0x11   :  { %181 = shalt.err (!%p178_p7)
}
  0x12   :  { %s257_s22 = smov 128   ;;  %s258_s23 = smov 8  }
  0x13   :  { %30 = dma.hbm_to_vmem [thread:$0]  %s339_s0, 256, %s25_s13, [#allocation3], %s257_s22, %s257_s22, %s258_s23  }
  0x14   :  { %s259_s26 = smov [#allocation5]   ;;  %s182_s30 = scalar_lea.hbm %s340_s1, 256 }
  0x15   :  { %s42_s27 = sshll.u32 %s259_s26, 4  ;;  %p183_p8 = scmp.ne.s32.totalorder %s340_s1, %s182_s30  ;;  %s43_s27 = int_to_ptr.vmem [resolvable:$true] %s42_s27 }
  0x16   :  { %p186_p9 = scmp.lt.u32.totalorder %s182_s30, %s340_s1 }
  0x18   :  { %p188_p10 = pnand %p186_p9, %p183_p8 }
  0x1a   :  { %191 = shalt.err (!%p188_p10)
}
  0x1b   :  { %s192_s8 = scalar_lea.vmem %s43_s27, 256  ;;  %p197_p12 = scmp.lt.s32.totalorder %s43_s27, %s43_s27 }
  0x1c   :  { %p193_p11 = scmp.ne.s32.totalorder %s43_s27, %s192_s8  ;;  %p198_p13 = scmp.lt.s32.totalorder %s192_s8, %s192_s8 }
  0x1e   :  { %p199_p0 = por %p198_p13, %p197_p12 }
  0x20   :  { %p200_p1 = pnand %p199_p0, %p193_p11 }
  0x22   :  { %203 = shalt.err (!%p200_p1)
}
  0x23   :  { %48 = dma.hbm_to_vmem [thread:$0]  %s340_s1, 256, %s43_s27, [#allocation6], %s257_s22, %s257_s22, %s258_s23  }
  0x24   :  { %248 = dma.done.wait [#allocation3], 256  }
  0x25   :  { %249 = vsyncadd [#allocation3], 4294967040 }
  0x26   :  { %250 = dma.done.wait [#allocation6], 256  }
  0x27   :  { %251 = vsyncadd [#allocation6], 4294967040  ;;  %v260_v0 = vmov 0.0   ;;  %v69_v1 = vld [vmem:[#allocation2] sm:$0xff]  ;;  %v70_v2 = vld [vmem:[#allocation2 + $0x8] sm:$0xff]  ;;  %s261_s1 = smov [#allocation7]  }
  0x28   :  { %67 = vst [vmem:[#allocation7] sm:$0x1] %v260_v0  ;;  %68 = vst [vmem:[#allocation8] sm:$0x1] %v260_v0  ;;  %v143_v3 = vmul.f32 -1.442695, %v69_v1 }
  0x29   :  { %v144_v4 = vmul.f32 -1.442695, %v70_v2  ;;  %v71_v9 = vld [vmem:[#allocation5] sm:$0xff]  ;;  %v72_v10 = vld [vmem:[#allocation5 + $0x8] sm:$0xff]  ;;  %s115_s10 = sshll.u32 %s261_s1, 4  ;;  %s262_s11 = smov [#allocation8]   ;;  %s116_s10 = int_to_ptr.vmem [resolvable:$true] %s115_s10 }
  0x2a   :  { %152 = vpow2.f32 %v143_v3  ;;  %s125_s12 = sshll.u32 %s262_s11, 4  ;;  %s204_s13 = scalar_lea.vmem %s116_s10, 16  ;;  %s307_s12 = int_to_ptr.vmem [resolvable:$true] %s125_s12 }
  0x2b   :  { %154 = vpow2.f32 %v144_v4  ;;  %p205_p2 = scmp.ne.s32.totalorder %s116_s10, %s204_s13  ;;  %s208_s14 = scalar_lea.vmem %s116_s10, 32 }
  0x2c   :  { %p209_p3 = scmp.lt.s32.totalorder %s116_s10, %s116_s10  ;;  %p210_p4 = scmp.lt.s32.totalorder %s208_s14, %s204_s13 }
  0x2e   :  { %p211_p5 = por %p210_p4, %p209_p3 }
  0x2f   :  { %v85_v29 = vld [vmem:[#allocation7] sm:$0x1]  ;;  %v97_v30 = vld [vmem:[#allocation8] sm:$0x1] }
  0x30   :  { %p212_p6 = pnand %p211_p5, %p205_p2 }
  0x34   :  { %v153_v5 = vpop.eup %152 }
  0x35   :  { %v155_v6 = vpop.eup %154  ;;  %v79_v7 = vadd.f32 1.0, %v153_v5 }
  0x36   :  { %v80_v8 = vadd.f32 1.0, %v155_v6 }
  0x37   :  { %156 = vrcp.f32 %v79_v7 }
  0x38   :  { %158 = vrcp.f32 %v80_v8 }
  0x41   :  { %v157_v11 = vpop.eup %156 }
  0x42   :  { %v159_v12 = vpop.eup %158  ;;  %v86_v13 = vmul.f32 %v157_v11, %v71_v9  ;;  %v98_v14 = vadd.f32 %v157_v11, %v71_v9 }
  0x43   :  { %v87_v15 = vmul.f32 %v159_v12, %v72_v10  ;;  %v99_v16 = vadd.f32 %v159_v12, %v72_v10 }
  0x45   :  { %v88_v17 = vadd.f32 %v87_v15, %v86_v13  ;;  %v100_v18 = vadd.f32 %v99_v16, %v98_v14 }
  0x47   :  { %v89_v19 = vrot.slane %v88_v17, 4  ;;  %v101_v20 = vrot.slane %v100_v18, 4 }
  0x49   :  { %v90_v21 = vadd.f32 %v89_v19, %v88_v17  ;;  %v102_v22 = vadd.f32 %v101_v20, %v100_v18 }
  0x4b   :  { %v91_v23 = vrot.slane %v90_v21, 2  ;;  %v103_v24 = vrot.slane %v102_v22, 2 }
  0x4d   :  { %v92_v25 = vadd.f32 %v91_v23, %v90_v21  ;;  %v104_v26 = vadd.f32 %v103_v24, %v102_v22 }
  0x4f   :  { %v93_v27 = vrot.slane %v92_v25, 1  ;;  %v105_v28 = vrot.slane %v104_v26, 1 }
  0x51   :  { %v94_v31 = vadd.f32 %v93_v27, %v92_v25  ;;  %v106_v32 = vadd.f32 %v105_v28, %v104_v26 }
  0x53   :  { %v95_v33 = vadd.f32 %v94_v31, %v85_v29  ;;  %v107_v34 = vadd.f32 %v106_v32, %v97_v30 }
  0x55   :  { %96 = vst [vmem:[#allocation7] sm:$0x1] %v95_v33  ;;  %108 = vst [vmem:[#allocation8] sm:$0x1] %v107_v34 }
  0x56   :  { %215 = shalt.err (!%p212_p6)
}
  0x57   :  { %s216_s17 = scalar_lea.hbm %s341_s2, 16 }
  0x58   :  { %p217_p7 = scmp.ne.s32.totalorder %s341_s2, %s216_s17  ;;  %p220_p8 = scmp.lt.u32.totalorder %s216_s17, %s341_s2 }
  0x5a   :  { %p222_p9 = pnand %p220_p8, %p217_p7 }
  0x5c   :  { %225 = shalt.err (!%p222_p9)
}
  0x5d   :  { %118 = dma.vmem_to_hbm [thread:$0]  %s116_s10, 16, %s341_s2, [#allocation4]  }
  0x5e   :  { %s226_s24 = scalar_lea.vmem %s307_s12, 16  ;;  %s230_s25 = scalar_lea.vmem %s307_s12, 32 }
  0x5f   :  { %p227_p10 = scmp.ne.s32.totalorder %s307_s12, %s226_s24  ;;  %p231_p11 = scmp.lt.s32.totalorder %s307_s12, %s307_s12 }
  0x60   :  { %p232_p12 = scmp.lt.s32.totalorder %s230_s25, %s226_s24 }
  0x62   :  { %p233_p13 = por %p232_p12, %p231_p11 }
  0x64   :  { %p234_p0 = pnand %p233_p13, %p227_p10 }
  0x66   :  { %237 = shalt.err (!%p234_p0)
}
  0x67   :  { %s238_s28 = scalar_lea.hbm %s342_s3, 16 }
  0x68   :  { %p239_p1 = scmp.ne.s32.totalorder %s342_s3, %s238_s28  ;;  %p242_p2 = scmp.lt.u32.totalorder %s238_s28, %s342_s3 }
  0x6a   :  { %p244_p3 = pnand %p242_p2, %p239_p1 }
  0x6c   :  { %247 = shalt.err (!%p244_p3)
}
  0x6d   :  { %128 = dma.vmem_to_hbm [thread:$0]  %s307_s12, 16, %s342_s3, [#allocation9]  }
  0x6e   :  { %252 = dma.done.wait [#allocation4], 16  }
  0x6f   :  { %253 = vsyncadd [#allocation4], 4294967280 }
  0x70   :  { %254 = dma.done.wait [#allocation9], 16  }
  0x71   :  { %255 = vsyncadd [#allocation9], 4294967280 }
  0x72   :  { %135 = vsyncpa [#allocation3], 1 }
  0x73   :  { %136 = vsyncpa [#allocation6], 1 }
  0x74   :  { %137 = vsyncpa [#allocation4], 1 }
  0x75   :  { %138 = vsyncpa [#allocation9], 1 }

</bundles_post_ra>
